<compile_context>
chip_gen: v7x
topology: tpu7x:2x2x1
jax: 0.10.0
libtpu: 0.0.40
codegen_flags: <defaults>
</compile_context>

<pallas_src>
import functools

import jax
import jax.numpy as jnp
import numpy as np
from jax.experimental import pallas as pl
from jax.experimental.pallas import tpu as pltpu


def _topology_kernel(pred_ref, tgt_ref, topo_out_ref, dice_out_ref,
                     topo_acc, a_acc, b_acc, c_acc,
                     *, hw, eps_topo, eps_dice):
    # pred_ref : (1, C, St, 128)   tgt_ref : (1, St, 128)
    s_idx = pl.program_id(1)

    @pl.when(s_idx == 0)
    def _init():
        topo_acc[...] = jnp.zeros_like(topo_acc)
        a_acc[...] = jnp.zeros_like(a_acc)
        b_acc[...] = jnp.zeros_like(b_acc)
        c_acc[...] = jnp.zeros_like(c_acc)

    # Cast after load: DMA native dtype, accumulate in f32.
    p = pred_ref[0].astype(jnp.float32)          # (C, St, 128)
    t = tgt_ref[0].astype(jnp.float32)           # (St, 128)

    s = jnp.sum(p, axis=0)                       # channel sum  (St, 128)
    m = jnp.max(p, axis=0)                       # channel max  (St, 128)

    # Dense per-tile VPU adds into scratch; zero-padded pixels contribute 0.
    topo_acc[...] += 1.0 - (m + eps_topo) / (s + eps_topo)
    a_acc[...] += m * t
    b_acc[...] += m * m
    c_acc[...] += t * t

    @pl.when(s_idx == pl.num_programs(1) - 1)
    def _finalize():
        def _reduce(ref):
            r = jnp.sum(ref[...], axis=1, keepdims=True)      # (St, 1)
            return jnp.sum(r, axis=0, keepdims=True)           # (1, 1)

        topo_sum = _reduce(topo_acc)
        a = _reduce(a_acc)
        b = _reduce(b_acc) + eps_dice
        c = _reduce(c_acc) + eps_dice

        topo_out_ref[...] = (topo_sum / float(hw))[None]        # (1, 1, 1)
        dice_out_ref[...] = (1.0 - 2.0 * a / (b + c))[None]     # (1, 1, 1)


def _nearest_resize_nchw(x, out_h, out_w):
    """PyTorch F.interpolate(mode='nearest') equivalent for NCHW (plain JAX glue).

    src_index = floor(dst_index * in / out), computed with exact integer math.
    """
    b, c, H, W = x.shape
    if (H, W) == (out_h, out_w):
        return x
    rows = (jnp.arange(out_h, dtype=jnp.int32) * H) // out_h
    cols = (jnp.arange(out_w, dtype=jnp.int32) * W) // out_w
    rows = jnp.clip(rows, 0, H - 1)
    cols = jnp.clip(cols, 0, W - 1)
    return x[:, :, rows][:, :, :, cols]


def _choose_spatial_tile(S, C, itemsize):
    """Pick the spatial tile (in 128-lane rows).

    ~4 MiB of pred per block (double-buffered ~8 MiB) keeps the working set
    well inside v7x's 64 MiB VMEM while giving large, efficient DMAs on
    v5e/v6e.  Prefer a tile that divides the 8-padded extent so no HBM-side
    pad copy is needed when HW is already a multiple of 128.
    """
    if S <= 8:
        return S                      # block dim equals full array dim -> legal
    budget = 4 * 1024 * 1024
    rows = budget // max(1, C * 128 * itemsize)
    rows = int(max(8, min(rows, 2048)))
    rows -= rows % 8                  # sublane granularity
    S8 = -(-S // 8) * 8               # 8-padded spatial extent
    rows = min(rows, S8)
    for cand in range(rows, 7, -8):   # prefer divisors of S8 (minimal padding)
        if S8 % cand == 0:
            return cand
    return rows


def topology_loss_pallas(pred, target, *, loss_weight=1.0,
                         topo_dice_weight=(0.5, 0.5), eps=1e-3,
                         spatial_tile=None):
    bs, C, h, w = pred.shape
    hw = h * w

    # Nearest-resize target to pred's spatial resolution (dtype-preserving glue).
    tgt = _nearest_resize_nchw(target, h, w)                    # (bs, 1, h, w)

    # Lane-dense spatial layout: HW -> (S, 128).
    S = -(-hw // 128)
    if spatial_tile is None:
        St = _choose_spatial_tile(S, C, pred.dtype.itemsize)
    else:
        St = int(spatial_tile)
    S_pad = -(-S // St) * St
    pad = S_pad * 128 - hw

    pred_flat = pred.reshape(bs, C, hw)                         # free (contiguous)
    tgt_flat = tgt.reshape(bs, hw)
    if pad:
        # Zero padding is loss-neutral (contributes 0 to every accumulator).
        pred_flat = jnp.pad(pred_flat, ((0, 0), (0, 0), (0, pad)))
        tgt_flat = jnp.pad(tgt_flat, ((0, 0), (0, pad)))
    pred_r = pred_flat.reshape(bs, C, S_pad, 128)
    tgt_r = tgt_flat.reshape(bs, S_pad, 128)

    # NOTE: dice eps is hard-coded to 1e-3 to mirror the PyTorch dice_loss
    # default (topology_loss never forwards `eps` to dice_loss).
    kernel = functools.partial(_topology_kernel, hw=hw,
                               eps_topo=float(eps), eps_dice=1e-3)

    topo_per_b, dice_per_b = pl.pallas_call(
        kernel,
        grid=(bs, S_pad // St),
        in_specs=[
            pl.BlockSpec((1, C, St, 128), lambda b, s: (b, 0, s, 0)),
            pl.BlockSpec((1, St, 128), lambda b, s: (b, s, 0)),
        ],
        out_specs=[
            pl.BlockSpec((1, 1, 1), lambda b, s: (b, 0, 0)),
            pl.BlockSpec((1, 1, 1), lambda b, s: (b, 0, 0)),
        ],
        out_shape=[
            jax.ShapeDtypeStruct((bs, 1, 1), jnp.float32),
            jax.ShapeDtypeStruct((bs, 1, 1), jnp.float32),
        ],
        scratch_shapes=[pltpu.VMEM((St, 128), jnp.float32)] * 4,
        compiler_params=pltpu.CompilerParams(
            dimension_semantics=("parallel", "arbitrary")),
    )(pred_r, tgt_r)

    topo_mean = jnp.mean(topo_per_b)
    dice_mean = jnp.mean(dice_per_b)
    loss = topo_mean * topo_dice_weight[0] + dice_mean * topo_dice_weight[1]
    return loss_weight * loss


def _reference_loss(pred, target, *, loss_weight=1.0,
                    topo_dice_weight=(0.5, 0.5), eps=1e-3):
    """Pure-JAX reference mirroring the PyTorch TopologyLoss.forward."""
    bs, C, h, w = pred.shape
    tgt = _nearest_resize_nchw(target.astype(jnp.float32), h, w)
    pred = pred.astype(jnp.float32)
    s = jnp.sum(pred, axis=1).reshape(bs, -1)
    m = jnp.max(pred, axis=1).reshape(bs, -1)
    topo = 1.0 - (m + eps) / (s + eps)
    t = tgt.reshape(bs, -1)
    a = jnp.sum(m * t, axis=1)
    b = jnp.sum(m * m, axis=1) + 1e-3
    c = jnp.sum(t * t, axis=1) + 1e-3
    dice = 1.0 - 2.0 * a / (b + c)
    return loss_weight * (topo.mean() * topo_dice_weight[0]
                          + dice.mean() * topo_dice_weight[1])


if __name__ == "__main__":
    key = jax.random.PRNGKey(0)
    k1, k2, k3, k4 = jax.random.split(key, 4)

    # Case 1: multi-tile spatial accumulation (4 spatial grid steps),
    # target nearest-upsampled 32x32 -> 64x64.
    pred1 = jax.random.uniform(k1, (2, 4, 64, 64), dtype=jnp.float32)
    tgt1 = jax.random.bernoulli(k2, 0.3, (2, 1, 32, 32)).astype(jnp.float32)
    out1 = jax.block_until_ready(
        topology_loss_pallas(pred1, tgt1, loss_weight=1.0,
                             topo_dice_weight=(0.5, 0.5), eps=1e-3,
                             spatial_tile=8))
    ref1 = jax.block_until_ready(_reference_loss(pred1, tgt1))
    np.testing.assert_allclose(np.asarray(out1), np.asarray(ref1),
                               rtol=1e-5, atol=1e-6)

    # Case 2: small odd-sized image (HW not a multiple of 128 -> zero padding),
    # single spatial tile, target nearest-downsampled 32x32 -> 24x20, C=3.
    pred2 = jax.random.uniform(k3, (2, 3, 24, 20), dtype=jnp.float32)
    tgt2 = jax.random.bernoulli(k4, 0.3, (2, 1, 32, 32)).astype(jnp.float32)
    out2 = jax.block_until_ready(topology_loss_pallas(pred2, tgt2))
    ref2 = jax.block_until_ready(_reference_loss(pred2, tgt2))
    np.testing.assert_allclose(np.asarray(out2), np.asarray(ref2),
                               rtol=1e-5, atol=1e-6)

    # Case 3: auto tile chooser on a 128-multiple spatial size (no pad copy),
    # bf16 pred (cast to f32 inside the kernel).
    pred3 = jax.random.uniform(k1, (2, 4, 64, 64), dtype=jnp.float32
                               ).astype(jnp.bfloat16)
    out3 = jax.block_until_ready(topology_loss_pallas(pred3, tgt1))
    ref3 = jax.block_until_ready(_reference_loss(pred3, tgt1))
    np.testing.assert_allclose(np.asarray(out3), np.asarray(ref3),
                               rtol=2e-3, atol=2e-3)

    print("KERNEL_OK")
</pallas_src>

<mosaic_0001>
module attributes {stable_mosaic.version = 11 : i64} {
  func.func @_topology_kernel(%arg0: i32, %arg1: i32, %arg2: memref<1x4x8x128xf32, #tpu.memory_space<vmem>>, %arg3: memref<1x8x128xf32, #tpu.memory_space<vmem>>, %arg4: memref<1x1x1xf32, #tpu.memory_space<vmem>>, %arg5: memref<1x1x1xf32, #tpu.memory_space<vmem>>, %arg6: memref<8x128xf32, #tpu.memory_space<vmem>>, %arg7: memref<8x128xf32, #tpu.memory_space<vmem>>, %arg8: memref<8x128xf32, #tpu.memory_space<vmem>>, %arg9: memref<8x128xf32, #tpu.memory_space<vmem>>) attributes {dimension_semantics = [#tpu.dimension_semantics<parallel>, #tpu.dimension_semantics<arbitrary>], iteration_bounds = array<i64: 2, 4>, scalar_prefetch = 0 : i64, scratch_operands = 4 : i64, tpu.core_type = #tpu.core_type<tc>, window_params = [{transform_indices = @transform_0, window_bounds = array<i64: 1, 4, 8, 128>}, {transform_indices = @transform_1, window_bounds = array<i64: 1, 8, 128>}, {transform_indices = @transform_2, window_bounds = array<i64: 1, 1, 1>}, {transform_indices = @transform_3, window_bounds = array<i64: 1, 1, 1>}]} {
    %c0_i32 = arith.constant 0 : i32
    %0 = arith.cmpi eq, %arg1, %c0_i32 : i32
    %1 = arith.extui %0 : i1 to i32
    %c0_i32_0 = arith.constant 0 : i32
    %2 = arith.cmpi ne, %1, %c0_i32_0 : i32
    scf.if %2 {
      %cst_28 = arith.constant 0.000000e+00 : f32
      %34 = vector.broadcast %cst_28 : f32 to vector<8x128xf32>
      %c0_29 = arith.constant 0 : index
      %c0_30 = arith.constant 0 : index
      %35 = vector.load %arg6[%c0_29, %c0_30] : memref<8x128xf32, #tpu.memory_space<vmem>>, vector<8x128xf32>
      tpu.vector_store %arg6[%c0_29, %c0_30], %34 {strides = array<i32>} : memref<8x128xf32, #tpu.memory_space<vmem>>, vector<8x128xf32>,
      %cst_31 = arith.constant 0.000000e+00 : f32
      %36 = vector.broadcast %cst_31 : f32 to vector<8x128xf32>
      %c0_32 = arith.constant 0 : index
      %c0_33 = arith.constant 0 : index
      %37 = vector.load %arg7[%c0_32, %c0_33] : memref<8x128xf32, #tpu.memory_space<vmem>>, vector<8x128xf32>
      tpu.vector_store %arg7[%c0_32, %c0_33], %36 {strides = array<i32>} : memref<8x128xf32, #tpu.memory_space<vmem>>, vector<8x128xf32>,
      %cst_34 = arith.constant 0.000000e+00 : f32
      %38 = vector.broadcast %cst_34 : f32 to vector<8x128xf32>
      %c0_35 = arith.constant 0 : index
      %c0_36 = arith.constant 0 : index
      %39 = vector.load %arg8[%c0_35, %c0_36] : memref<8x128xf32, #tpu.memory_space<vmem>>, vector<8x128xf32>
      tpu.vector_store %arg8[%c0_35, %c0_36], %38 {strides = array<i32>} : memref<8x128xf32, #tpu.memory_space<vmem>>, vector<8x128xf32>,
      %cst_37 = arith.constant 0.000000e+00 : f32
      %40 = vector.broadcast %cst_37 : f32 to vector<8x128xf32>
      %c0_38 = arith.constant 0 : index
      %c0_39 = arith.constant 0 : index
      %41 = vector.load %arg9[%c0_38, %c0_39] : memref<8x128xf32, #tpu.memory_space<vmem>>, vector<8x128xf32>
      tpu.vector_store %arg9[%c0_38, %c0_39], %40 {strides = array<i32>} : memref<8x128xf32, #tpu.memory_space<vmem>>, vector<8x128xf32>,
    } else {
    }
    %c0 = arith.constant 0 : index
    %c0_1 = arith.constant 0 : index
    %c0_2 = arith.constant 0 : index
    %c0_3 = arith.constant 0 : index
    %3 = vector.load %arg2[%c0, %c0_1, %c0_2, %c0_3] : memref<1x4x8x128xf32, #tpu.memory_space<vmem>>, vector<1x4x8x128xf32>
    %4 = vector.shape_cast %3 : vector<1x4x8x128xf32> to vector<4x8x128xf32>
    %c0_4 = arith.constant 0 : index
    %c0_5 = arith.constant 0 : index
    %c0_6 = arith.constant 0 : index
    %5 = vector.load %arg3[%c0_4, %c0_5, %c0_6] : memref<1x8x128xf32, #tpu.memory_space<vmem>>, vector<1x8x128xf32>
    %6 = vector.shape_cast %5 : vector<1x8x128xf32> to vector<8x128xf32>
    %cst = arith.constant dense<0.000000e+00> : vector<8x128xf32>
    %7 = vector.multi_reduction <add>, %4, %cst [0] : vector<4x8x128xf32> to vector<8x128xf32>
    %cst_7 = arith.constant dense<0xFF800000> : vector<8x128xf32>
    %8 = vector.multi_reduction <maximumf>, %4, %cst_7 [0] : vector<4x8x128xf32> to vector<8x128xf32>
    %c0_8 = arith.constant 0 : index
    %c0_9 = arith.constant 0 : index
    %9 = vector.load %arg6[%c0_8, %c0_9] : memref<8x128xf32, #tpu.memory_space<vmem>>, vector<8x128xf32>
    %cst_10 = arith.constant 1.000000e-03 : f32
    %10 = vector.broadcast %cst_10 : f32 to vector<8x128xf32>
    %11 = arith.addf %8, %10 : vector<8x128xf32>
    %cst_11 = arith.constant 1.000000e-03 : f32
    %12 = vector.broadcast %cst_11 : f32 to vector<8x128xf32>
    %13 = arith.addf %7, %12 : vector<8x128xf32>
    %14 = arith.divf %11, %13 : vector<8x128xf32>
    %cst_12 = arith.constant 1.000000e+00 : f32
    %15 = vector.broadcast %cst_12 : f32 to vector<8x128xf32>
    %16 = arith.subf %15, %14 : vector<8x128xf32>
    %17 = arith.addf %9, %16 : vector<8x128xf32>
    %c0_13 = arith.constant 0 : index
    %c0_14 = arith.constant 0 : index
    %18 = vector.load %arg6[%c0_13, %c0_14] : memref<8x128xf32, #tpu.memory_space<vmem>>, vector<8x128xf32>
    tpu.vector_store %arg6[%c0_13, %c0_14], %17 {strides = array<i32>} : memref<8x128xf32, #tpu.memory_space<vmem>>, vector<8x128xf32>,
    %c0_15 = arith.constant 0 : index
    %c0_16 = arith.constant 0 : index
    %19 = vector.load %arg7[%c0_15, %c0_16] : memref<8x128xf32, #tpu.memory_space<vmem>>, vector<8x128xf32>
    %20 = arith.mulf %8, %6 : vector<8x128xf32>
    %21 = arith.addf %19, %20 : vector<8x128xf32>
    %c0_17 = arith.constant 0 : index
    %c0_18 = arith.constant 0 : index
    %22 = vector.load %arg7[%c0_17, %c0_18] : memref<8x128xf32, #tpu.memory_space<vmem>>, vector<8x128xf32>
    tpu.vector_store %arg7[%c0_17, %c0_18], %21 {strides = array<i32>} : memref<8x128xf32, #tpu.memory_space<vmem>>, vector<8x128xf32>,
    %c0_19 = arith.constant 0 : index
    %c0_20 = arith.constant 0 : index
    %23 = vector.load %arg8[%c0_19, %c0_20] : memref<8x128xf32, #tpu.memory_space<vmem>>, vector<8x128xf32>
    %24 = arith.mulf %8, %8 : vector<8x128xf32>
    %25 = arith.addf %23, %24 : vector<8x128xf32>
    %c0_21 = arith.constant 0 : index
    %c0_22 = arith.constant 0 : index
    %26 = vector.load %arg8[%c0_21, %c0_22] : memref<8x128xf32, #tpu.memory_space<vmem>>, vector<8x128xf32>
    tpu.vector_store %arg8[%c0_21, %c0_22], %25 {strides = array<i32>} : memref<8x128xf32, #tpu.memory_space<vmem>>, vector<8x128xf32>,
    %c0_23 = arith.constant 0 : index
    %c0_24 = arith.constant 0 : index
    %27 = vector.load %arg9[%c0_23, %c0_24] : memref<8x128xf32, #tpu.memory_space<vmem>>, vector<8x128xf32>
    %28 = arith.mulf %6, %6 : vector<8x128xf32>
    %29 = arith.addf %27, %28 : vector<8x128xf32>
    %c0_25 = arith.constant 0 : index
    %c0_26 = arith.constant 0 : index
    %30 = vector.load %arg9[%c0_25, %c0_26] : memref<8x128xf32, #tpu.memory_space<vmem>>, vector<8x128xf32>
    tpu.vector_store %arg9[%c0_25, %c0_26], %29 {strides = array<i32>} : memref<8x128xf32, #tpu.memory_space<vmem>>, vector<8x128xf32>,
    %c3_i32 = arith.constant 3 : i32
    %31 = arith.cmpi eq, %arg1, %c3_i32 : i32
    %32 = arith.extui %31 : i1 to i32
    %c0_i32_27 = arith.constant 0 : i32
    %33 = arith.cmpi ne, %32, %c0_i32_27 : i32
    scf.if %33 {
      %c0_28 = arith.constant 0 : index
      %c0_29 = arith.constant 0 : index
      %34 = vector.load %arg6[%c0_28, %c0_29] : memref<8x128xf32, #tpu.memory_space<vmem>>, vector<8x128xf32>
      %cst_30 = arith.constant dense<0.000000e+00> : vector<8xf32>
      %35 = vector.multi_reduction <add>, %34, %cst_30 [1] : vector<8x128xf32> to vector<8xf32>
      %36 = vector.shape_cast %35 : vector<8xf32> to vector<8x1xf32>
      %cst_31 = arith.constant dense<0.000000e+00> : vector<1xf32>
      %37 = vector.multi_reduction <add>, %36, %cst_31 [0] : vector<8x1xf32> to vector<1xf32>
      %38 = vector.shape_cast %37 : vector<1xf32> to vector<1x1xf32>
      %c0_32 = arith.constant 0 : index
      %c0_33 = arith.constant 0 : index
      %39 = vector.load %arg7[%c0_32, %c0_33] : memref<8x128xf32, #tpu.memory_space<vmem>>, vector<8x128xf32>
      %cst_34 = arith.constant dense<0.000000e+00> : vector<8xf32>
      %40 = vector.multi_reduction <add>, %39, %cst_34 [1] : vector<8x128xf32> to vector<8xf32>
      %41 = vector.shape_cast %40 : vector<8xf32> to vector<8x1xf32>
      %cst_35 = arith.constant dense<0.000000e+00> : vector<1xf32>
      %42 = vector.multi_reduction <add>, %41, %cst_35 [0] : vector<8x1xf32> to vector<1xf32>
      %43 = vector.shape_cast %42 : vector<1xf32> to vector<1x1xf32>
      %c0_36 = arith.constant 0 : index
      %c0_37 = arith.constant 0 : index
      %44 = vector.load %arg8[%c0_36, %c0_37] : memref<8x128xf32, #tpu.memory_space<vmem>>, vector<8x128xf32>
      %cst_38 = arith.constant dense<0.000000e+00> : vector<8xf32>
      %45 = vector.multi_reduction <add>, %44, %cst_38 [1] : vector<8x128xf32> to vector<8xf32>
      %46 = vector.shape_cast %45 : vector<8xf32> to vector<8x1xf32>
      %cst_39 = arith.constant dense<0.000000e+00> : vector<1xf32>
      %47 = vector.multi_reduction <add>, %46, %cst_39 [0] : vector<8x1xf32> to vector<1xf32>
      %48 = vector.shape_cast %47 : vector<1xf32> to vector<1x1xf32>
      %cst_40 = arith.constant 1.000000e-03 : f32
      %49 = vector.broadcast %cst_40 : f32 to vector<1x1xf32>
      %50 = arith.addf %48, %49 : vector<1x1xf32>
      %c0_41 = arith.constant 0 : index
      %c0_42 = arith.constant 0 : index
      %51 = vector.load %arg9[%c0_41, %c0_42] : memref<8x128xf32, #tpu.memory_space<vmem>>, vector<8x128xf32>
      %cst_43 = arith.constant dense<0.000000e+00> : vector<8xf32>
      %52 = vector.multi_reduction <add>, %51, %cst_43 [1] : vector<8x128xf32> to vector<8xf32>
      %53 = vector.shape_cast %52 : vector<8xf32> to vector<8x1xf32>
      %cst_44 = arith.constant dense<0.000000e+00> : vector<1xf32>
      %54 = vector.multi_reduction <add>, %53, %cst_44 [0] : vector<8x1xf32> to vector<1xf32>
      %55 = vector.shape_cast %54 : vector<1xf32> to vector<1x1xf32>
      %cst_45 = arith.constant 1.000000e-03 : f32
      %56 = vector.broadcast %cst_45 : f32 to vector<1x1xf32>
      %57 = arith.addf %55, %56 : vector<1x1xf32>
      %cst_46 = arith.constant 4.096000e+03 : f32
      %58 = vector.broadcast %cst_46 : f32 to vector<1x1xf32>
      %59 = arith.divf %38, %58 : vector<1x1xf32>
      %60 = vector.shape_cast %59 : vector<1x1xf32> to vector<1x1x1xf32>
      %c0_47 = arith.constant 0 : index
      %c0_48 = arith.constant 0 : index
      %c0_49 = arith.constant 0 : index
      %61 = vector.load %arg4[%c0_47, %c0_48, %c0_49] : memref<1x1x1xf32, #tpu.memory_space<vmem>>, vector<1x1x1xf32>
      tpu.vector_store %arg4[%c0_47, %c0_48, %c0_49], %60 {strides = array<i32>} : memref<1x1x1xf32, #tpu.memory_space<vmem>>, vector<1x1x1xf32>,
      %cst_50 = arith.constant 2.000000e+00 : f32
      %62 = vector.broadcast %cst_50 : f32 to vector<1x1xf32>
      %63 = arith.mulf %62, %43 : vector<1x1xf32>
      %64 = arith.addf %50, %57 : vector<1x1xf32>
      %65 = arith.divf %63, %64 : vector<1x1xf32>
      %cst_51 = arith.constant 1.000000e+00 : f32
      %66 = vector.broadcast %cst_51 : f32 to vector<1x1xf32>
      %67 = arith.subf %66, %65 : vector<1x1xf32>
      %68 = vector.shape_cast %67 : vector<1x1xf32> to vector<1x1x1xf32>
      %c0_52 = arith.constant 0 : index
      %c0_53 = arith.constant 0 : index
      %c0_54 = arith.constant 0 : index
      %69 = vector.load %arg5[%c0_52, %c0_53, %c0_54] : memref<1x1x1xf32, #tpu.memory_space<vmem>>, vector<1x1x1xf32>
      tpu.vector_store %arg5[%c0_52, %c0_53, %c0_54], %68 {strides = array<i32>} : memref<1x1x1xf32, #tpu.memory_space<vmem>>, vector<1x1x1xf32>,
    } else {
    }
    return
  }
  func.func @transform_0(%arg0: i32, %arg1: i32) -> (i32, i32, i32, i32) {
    %c0_i32 = arith.constant 0 : i32
    %c0_i32_0 = arith.constant 0 : i32
    %c0_i32_1 = arith.constant 0 : i32
    return %arg0, %c0_i32, %arg1, %c0_i32_0 : i32, i32, i32, i32
  }
  func.func @transform_1(%arg0: i32, %arg1: i32) -> (i32, i32, i32) {
    %c0_i32 = arith.constant 0 : i32
    %c0_i32_0 = arith.constant 0 : i32
    return %arg0, %arg1, %c0_i32 : i32, i32, i32
  }
  func.func @transform_2(%arg0: i32, %arg1: i32) -> (i32, i32, i32) {
    %c0_i32 = arith.constant 0 : i32
    %c0_i32_0 = arith.constant 0 : i32
    %c0_i32_1 = arith.constant 0 : i32
    return %arg0, %c0_i32, %c0_i32_0 : i32, i32, i32
  }
  func.func @transform_3(%arg0: i32, %arg1: i32) -> (i32, i32, i32) {
    %c0_i32 = arith.constant 0 : i32
    %c0_i32_0 = arith.constant 0 : i32
    %c0_i32_1 = arith.constant 0 : i32
    return %arg0, %c0_i32, %c0_i32_0 : i32, i32, i32
  }
}

</mosaic_0001>

<bundles_post_ra>
// kernel: tpu_custom_call.1
= control target key start
LH: loop header
LB: loop body
LE: loop exit
PB: predicated region body
PF: predicated region fallthrough
CT: control target
= control target key end

     0   :  { %s934_s0 = inlined_call_operand.hbm [shape: f32[2,4,32,128], index: 0, kind: input, shape index: {}]   ;;  %s935_s1 = inlined_call_operand.hbm [shape: f32[2,32,128], index: 1, kind: input, shape index: {}]   ;;  %s936_s2 = inlined_call_operand.vmem [shape: f32[2,1,1], index: 2, kind: output, shape index: {0}]   ;;  %s937_s3 = inlined_call_operand.vmem [shape: f32[2,1,1], index: 3, kind: output, shape index: {1}]  }
   0x1   :  { %941 = sst [smem:[#allocation14_spill]] %s934_s0 }
   0x2   :  { %9 = vsyncpa [#allocation7], 0 }
   0x3   :  { %11 = vsyncpa [#allocation7 + $0x1], 0 }
   0x4   :  { %12 = vsyncpa [#allocation9], 0 }
   0x5   :  { %14 = vsyncpa [#allocation9 + $0x1], 0  ;;  %s724_s12 = smov 0   ;;  %s726_s13 = smov 0  }
   0x6   :  { %s728_s14 = smov 0   ;;  %s730_s15 = smov 0  }
   0x7   :  { %s732_s16 = smov 0   ;;  %s734_s17 = smov 0  }
   0x8   :  { %s736_s18 = smov 0   ;;  %s738_s19 = smov 0  }
   0x9 LB: > { %s465_s20 = sadd.s32 4294967295, %s696_s19   ;;  %s29_s21 = sadd.s32 1, %s688_s17  ;;  %s696_s19 = sphi %s738_s19, %s20_s19   ;;  %s692_s18 = sphi %s736_s18, %s959_s18   ;;  %s688_s17 = sphi %s734_s17, %s958_s17   ;;  %s684_s16 = sphi %s732_s16, %s957_s16   ;;  %s680_s15 = sphi %s730_s15, %s956_s15   ;;  %s676_s14 = sphi %s728_s14, %s955_s14   ;;  %s672_s13 = sphi %s726_s13, %s954_s13   ;;  %s668_s12 = sphi %s724_s12, %s953_s12  }
   0xa   : > { %p30_p0 = scmp.ge.s32.totalorder %s29_s21, 4  ;;  %s32_s22 = sadd.s32 1, %s692_s18 }
   0xb   : > { %s41_s23 = sadd.s32 1, %s676_s14  ;;  %p48_p1 = scmp.ne.s32.totalorder %s676_s14, %s672_s13 }
   0xc   : > { %s961_s21 = smov (%p30_p0, %s29_s21), 0  ;;  %s963_s22 = smov (!%p30_p0, %s32_s22), %s692_s18 }
   0xd   : > { %942 = sst [smem:[#allocation12_spill]] %s961_s21  ;;  %s37_s24 = ssub.s32 %s688_s17, %s961_s21 }
   0xe   : > { %p49_p2 = scmp.eq.s32.totalorder %s696_s19, 0  ;;  %p34_p3 = scmp.ge.s32.totalorder %s963_s22, 2 }
   0xf   : > { %p54_p4 = scmp.ne.s32.totalorder %s672_s13, %s668_s12  ;;  %p55_p6 = scmp.eq.s32.totalorder %s465_s20, 0 }
  0x10   : > { %p775_p5 = por %p49_p2, %p48_p1  ;;  %s965_s22 = smov (%p34_p3, %s963_s22), 0 }
  0x11   : > { %944 = sst [smem:[#allocation13_spill]] %s965_s22  ;;  %p781_p7 = por %p55_p6, %p54_p4 }
  0x12   : > { %s36_s27 = ssub.s32 %s692_s18, %s965_s22  ;;  %p493_p8 = scmp.lt.s32.totalorder %s696_s19, 8 }
  0x13   : > { %s945_s26 = scalar_select %p781_p7, 1, 0 }
  0x14   : > { %s38_s28 = sor.u32 %s37_s24, %s36_s27  ;;  %s789_s29 = sand.u32 1, %s676_s14  }
  0x15   : > { %p39_p9 = scmp.eq.s32.totalorder %s38_s28, 0  ;;  %s469_s30 = sshll.u32 %s789_s29, 5 }
  0x16   : > { %s470_s4 = sshll.u32 %s692_s18, 4  ;;  %s162_s8 = scalar_lea.vmem [#allocation6], %s469_s30 }
  0x17   : > { %s794_s5 = scalar_select %p39_p9, %s676_s14, %s41_s23  }
  0x18   : > { %s167_s6 = sadd.s32 %s688_s17, %s470_s4  ;;  %s170_s9 = sshll.u32 %s162_s8, 4  ;;  %s802_s9 = int_to_ptr.vmem [resolvable:$true] %s170_s9 }
  0x19   : > { %s471_s7 = sshll.u32 %s167_s6, 7  ;;  %s946_s0 = sld [smem:[#allocation14_spill]] }
  0x1a   : > { %p808_p10 = pnand %p493_p8, %p775_p5  ;;  %s159_s23 = scalar_lea.sflag [#allocation7], %s789_s29 }
  0x1c   : > { %p568_p13 = pneg %p808_p10 }
  0x1f   : > { %s800_s12 = scalar_lea.hbm %s946_s0, %s471_s7  ;;  %s571_s25 = scalar_lea.hbm %s946_s0, 4096 }
  0x20   : > { %s566_s24 = scalar_lea.hbm %s800_s12, 512  ;;  %p572_p2 = scmp.lt.u32.totalorder %s800_s12, %s946_s0 }
  0x21   : > { %p567_p12 = scmp.ne.s32.totalorder %s800_s12, %s566_s24  ;;  %p573_p3 = scmp.lt.u32.totalorder %s571_s25, %s566_s24 }
  0x22   : > { %p575_p5 = scmp.lt.u32.totalorder %s566_s24, %s800_s12 }
  0x23   : > { %p569_p0 = pnand %p568_p13, %p567_p12  ;;  %p574_p4 = por %p573_p3, %p572_p2 }
  0x25   : > { %p570_p1 = pneg %p569_p0  ;;  %p576_p6 = por %p575_p5, %p574_p4 }
  0x27   : > { %p577_p8 = pnand %p576_p6, %p570_p1 }
  0x29   : > { %580 = shalt.err (!%p577_p8)
}
  0x2a   : > { %s581_s6 = scalar_lea.vmem %s802_s9, 512  ;;  %s698_s7 = smov [#allocation6]  }
  0x2b   : > { %p582_p9 = scmp.ne.s32.totalorder %s802_s9, %s581_s6  ;;  %s586_s8 = sshll.u32 %s698_s7, 4  ;;  %s587_s8 = int_to_ptr.vmem [resolvable:$false] %s586_s8 }
  0x2c   : > { %s588_s10 = scalar_lea.vmem %s587_s8, 1024  ;;  %p589_p11 = scmp.lt.s32.totalorder %s802_s9, %s587_s8 }
  0x2d   : > { %p584_p12 = pnand %p582_p9, %p568_p13  ;;  %p590_p2 = scmp.lt.s32.totalorder %s588_s10, %s581_s6 }
  0x2f   : > { %p585_p0 = pneg %p584_p12  ;;  %p591_p3 = por %p590_p2, %p589_p11 }
  0x31   : > { %p592_p4 = pnand %p591_p3, %p585_p0 }
  0x33   : > { %595 = shalt.err (!%p592_p4)
}
  0x34   : > { %s699_s11 = smov 512   ;;  %s700_s24 = smov 128  }
  0x35   : > { %s701_s27 = smov 8   ;;  %p198_p11 = scmp.lt.s32.totalorder %s696_s19, 9 }
  0x36   : > { %489 = dma.hbm_to_vmem [thread:$0]  (!%p808_p10), %s800_s12, 512, %s802_s9, %s159_s23, %s699_s11, %s700_s24, %s701_s27  }
  0x37   : > { %s472_s28 = sshll.u32 %s789_s29, 3  ;;  %s473_s25 = sshll.u32 %s692_s18, 2 }
  0x38   : > { %p948_p1 = scmp.ge.s32.totalorder %s696_s19, 1  ;;  %s189_s4 = sadd.s32 %s688_s17, %s473_s25 }
  0x39   : > { %s184_s6 = scalar_lea.vmem [#allocation8], %s472_s28  ;;  %s474_s8 = sshll.u32 %s189_s4, 7 }
  0x3a   : > { %p846_p5 = pnand %p948_p1, %p198_p11  ;;  %s193_s7 = sshll.u32 %s184_s6, 4  ;;  %s851_s7 = int_to_ptr.vmem [resolvable:$true] %s193_s7 }
  0x3b   : > { %s191_s22 = scalar_lea.hbm %s935_s1, %s474_s8  ;;  %s181_s21 = scalar_lea.sflag [#allocation9], %s789_s29 }
  0x3c   : > { %s596_s9 = scalar_lea.hbm %s191_s22, 128  ;;  %s601_s11 = scalar_lea.hbm %s935_s1, 1024 }
  0x3d   : > { %p597_p6 = scmp.ne.s32.totalorder %s191_s22, %s596_s9  ;;  %p602_p12 = scmp.lt.u32.totalorder %s191_s22, %s935_s1 }
  0x3e   : > { %p603_p0 = scmp.lt.u32.totalorder %s601_s11, %s596_s9  ;;  %p605_p3 = scmp.lt.u32.totalorder %s596_s9, %s191_s22 }
  0x3f   : > { %p599_p8 = pnand %p597_p6, %p568_p13 }
  0x40   : > { %p604_p2 = por %p603_p0, %p602_p12 }
  0x41   : > { %p600_p9 = pneg %p599_p8 }
  0x42   : > { %p606_p4 = por %p605_p3, %p604_p2 }
  0x44   : > { %p607_p11 = pnand %p606_p4, %p600_p9 }
  0x46   : > { %610 = shalt.err (!%p607_p11)
}
  0x47   : > { %s611_s0 = scalar_lea.vmem %s851_s7, 128  ;;  %s702_s29 = smov [#allocation8]  }
  0x48   : > { %p612_p1 = scmp.ne.s32.totalorder %s851_s7, %s611_s0  ;;  %s616_s28 = sshll.u32 %s702_s29, 4  ;;  %s617_s28 = int_to_ptr.vmem [resolvable:$false] %s616_s28 }
  0x49   : > { %s618_s25 = scalar_lea.vmem %s617_s28, 256  ;;  %p619_p7 = scmp.lt.s32.totalorder %s851_s7, %s617_s28 }
  0x4a   : > { %p614_p6 = pnand %p612_p1, %p568_p13  ;;  %p620_p12 = scmp.lt.s32.totalorder %s618_s25, %s611_s0 }
  0x4c   : > { %p615_p8 = pneg %p614_p6  ;;  %p621_p0 = por %p620_p12, %p619_p7 }
  0x4e   : > { %p622_p2 = pnand %p621_p0, %p615_p8 }
  0x50   : > { %625 = shalt.err (!%p622_p2)
}
  0x51   : > { %492 = dma.hbm_to_vmem [thread:$0]  (!%p808_p10), %s191_s22, 128, %s851_s7, %s181_s21  }
  0x52   : > { %202 = sbr.rel (%p846_p5) target bundleno = 298 (0x12a), region = 28  ;;  %s204_s4 = sand.u32 (!%p846_p5), 1, %s672_s13  }
  0x53   : > { %s476_s6 = sshll.u32 (!%p846_p5), %s204_s4, 5  ;;  %s205_s8 = scalar_lea.sflag (!%p846_p5), [#allocation7], %s204_s4 }
  0x54   : > { %s208_s10 = scalar_lea.vmem (!%p846_p5), [#allocation6], %s476_s6  ;;  %p950_p13 = scmp.ne.s32.totalorder (!%p846_p5), %s945_s26, 0 }
  0x59   : > { %659 = dma.done.wait (%p950_p13), %s205_s8, 512  }
  0x5a   : > { %661 = vsyncadd (%p950_p13), %s205_s8, 4294966784  ;;  %s477_s9 = sshll.u32 %s204_s4, 3  ;;  %s214_s12 = scalar_lea.sflag [#allocation9], %s204_s4 }
  0x5b   : > { %s217_s20 = scalar_lea.vmem [#allocation8], %s477_s9 }
  0x5c   : > { %663 = dma.done.wait (%p950_p13), %s214_s12, 128  }
  0x5d   : > { %665 = vsyncadd (%p950_p13), %s214_s12, 4294967168  ;;  %p246_p7 = scmp.lt.s32.totalorder %s684_s16, 1  ;;  %p478_p10 = scmp.ne.s32.totalorder %s680_s15, 0 }
  0x5e   : > { %v703_v0 = vmov (!%p478_p10), 0.0  }
  0x5f   : > { %s967_s16 = smov (!%p246_p7, %s684_s16), 1  ;;  %255 = sbr.rel (%p478_p10) target bundleno = 102 (0x66), region = 40 }
  0x60   : > { %s248_s30 = scalar_lea.vmem %s936_s2, %s967_s16  ;;  %s251_s11 = scalar_lea.vmem %s937_s3, %s967_s16  ;;  %256 = vst [vmem:[#allocation2] sm:$0xff] (!%p478_p10), %v703_v0  ;;  %257 = vst [vmem:[#allocation3] sm:$0xff] (!%p478_p10), %v703_v0 }
  0x61   : > { %258 = vst [vmem:[#allocation4] sm:$0xff] (!%p478_p10), %v703_v0  ;;  %259 = vst [vmem:[#allocation5] sm:$0xff] (!%p478_p10), %v703_v0 }
  0x66 PF: > { %v260_v1 = vld [vmem:[%s208_s10] sm:$0xff]  ;;  %v261_v2 = vld [vmem:[%s208_s10 + $0x8] sm:$0xff]  ;;  %v262_v3 = vld [vmem:[%s208_s10 + $0x10] sm:$0xff]  ;;  %p479_p5 = scmp.ne.s32.totalorder %s680_s15, 3 }
  0x67   : > { %v263_v4 = vld [vmem:[%s208_s10 + $0x18] sm:$0xff]  ;;  %v265_v5 = vadd.f32 %v261_v2, %v260_v1  ;;  %v268_v6 = vmax.f32 %v260_v1, %v261_v2  ;;  %v264_v7 = vld [vmem:[%s217_s20] sm:$0xff]  ;;  %vm335_vm0 = vcmask (!%p479_p5), 0  }
  0x68   : > { %v269_v8 = vmax.f32 %v262_v3, %v263_v4  ;;  %v287_v9 = vld [vmem:[#allocation5] sm:$0xff]  ;;  %v288_v10 = vmul.f32 %v264_v7, %v264_v7  ;;  %v279_v15 = vld [vmem:[#allocation3] sm:$0xff]  ;;  %v283_v16 = vld [vmem:[#allocation4] sm:$0xff] }
  0x69   : > { %v266_v11 = vadd.f32 %v265_v5, %v262_v3  ;;  %v271_v25 = vld [vmem:[#allocation2] sm:$0xff] }
  0x6a   : > { %v270_v12 = vmax.f32 %v268_v6, %v269_v8  ;;  %v289_v13 = vadd.f32 %v288_v10, %v287_v9 }
  0x6b   : > { %v267_v14 = vadd.f32 %v266_v11, %v263_v4 }
  0x6c   : > { %v280_v17 = vmul.f32 %v270_v12, %v264_v7  ;;  %v284_v18 = vmul.f32 %v270_v12, %v270_v12  ;;  %290 = vst [vmem:[#allocation5] sm:$0xff] %v289_v13  ;;  %v272_v22 = vadd.f32 0.001, %v270_v12 }
  0x6d   : > { %v273_v19 = vadd.f32 0.001, %v267_v14 }
  0x6e   : > { %v281_v20 = vadd.f32 %v280_v17, %v279_v15  ;;  %v285_v21 = vadd.f32 %v284_v18, %v283_v16 }
  0x6f   : > { %562 = vrcp.f32 %v273_v19 }
  0x70   : > { %282 = vst [vmem:[#allocation3] sm:$0xff] %v281_v20  ;;  %286 = vst [vmem:[#allocation4] sm:$0xff] %v285_v21 }
  0x73   : > { %v323_v30 = vld [vmem:[#allocation5] sm:$0xff] (!%p479_p5) }
  0x77   : > { %v313_v28 = vld [vmem:[#allocation4] sm:$0xff] (!%p479_p5)  ;;  %v304_v29 = vld [vmem:[#allocation3] sm:$0xff] (!%p479_p5) }
  0x78   : > { %314 = vadd.xlane.f32.xlu0 (!%p479_p5), %v313_v28  ;;  %305 = vadd.xlane.f32.xlu1 (!%p479_p5), %v304_v29 }
  0x79   : > { %v563_v23 = vpop.eup %562 }
  0x7a   : > { %v275_v24 = vmul.f32 %v563_v23, %v272_v22  ;;  %294 = sbr.rel (%p479_p5) target bundleno = 298 (0x12a), region = 44 }
  0x7c   : > { %v276_v26 = vsub.f32 1.0, %v275_v24  ;;  %324 = vadd.xlane.f32.xlu0 (!%p479_p5), %v323_v30 }
  0x7e   : > { %v277_v27 = vadd.f32 %v276_v26, %v271_v25 }
  0x80   : > { %278 = vst [vmem:[#allocation2] sm:$0xff] %v277_v27 }
  0x87   : > { %v295_v31 = vld [vmem:[#allocation2] sm:$0xff] }
  0x88   : > { %296 = vadd.xlane.f32.xlu1 %v295_v31 }
 0x105   : > { %v315_v32 = vpop.xlane.xlu0 %314  ;;  %v306_v33 = vpop.xlane.xlu1 %305 }
 0x106   : > { %v316_v34 = vrot.slane %v315_v32, 4  ;;  %v307_v41 = vrot.slane %v306_v33, 4 }
 0x108   : > { %v317_v35 = vadd.f32 %v316_v34, %v315_v32  ;;  %v308_v48 = vadd.f32 %v307_v41, %v306_v33 }
 0x109   : > { %v325_v36 = vpop.xlane.xlu0 %324 }
 0x10a   : > { %v318_v38 = vrot.slane %v317_v35, 2  ;;  %v326_v39 = vrot.slane %v325_v36, 4  ;;  %v309_v54 = vrot.slane %v308_v48, 2 }
 0x10c   : > { %v319_v42 = vadd.f32 %v318_v38, %v317_v35  ;;  %v327_v43 = vadd.f32 %v326_v39, %v325_v36  ;;  %v310_v60 = vadd.f32 %v309_v54, %v308_v48 }
 0x10e   : > { %v320_v45 = vrot.slane %v319_v42, 1  ;;  %v328_v46 = vrot.slane %v327_v43, 2  ;;  %v311_v62 = vrot.slane %v310_v60, 1 }
 0x110   : > { %v329_v49 = vadd.f32 %v328_v46, %v327_v43  ;;  %v321_v51 = vadd.f32 %v320_v45, %v319_v42  ;;  %v312_v63 = vadd.f32 %v311_v62, %v310_v60 }
 0x112   : > { %v330_v52 = vrot.slane %v329_v49, 1  ;;  %v322_v57 = vadd.f32 0.001, %v321_v51  ;;  %v337_v0 = vmul.f32 2.0, %v312_v63 }
 0x114   : > { %v331_v55 = vadd.f32 %v330_v52, %v329_v49 }
 0x115   : > { %v297_v37 = vpop.xlane.xlu1 %296 }
 0x116   : > { %v298_v40 = vrot.slane %v297_v37, 4  ;;  %v332_v58 = vadd.f32 0.001, %v331_v55 }
 0x118   : > { %v299_v44 = vadd.f32 %v298_v40, %v297_v37  ;;  %v338_v61 = vadd.f32 %v332_v58, %v322_v57 }
 0x11a   : > { %v300_v47 = vrot.slane %v299_v44, 2  ;;  %564 = vrcp.f32 %v338_v61 }
 0x11c   : > { %v301_v50 = vadd.f32 %v300_v47, %v299_v44 }
 0x11e   : > { %v302_v53 = vrot.slane %v301_v50, 1 }
 0x120   : > { %v303_v56 = vadd.f32 %v302_v53, %v301_v50 }
 0x122   : > { %v334_v59 = vmul.f32 0.00024414063, %v303_v56 }
 0x124   : > { %336 = vst.msk [vmem:[%s248_s30] sm:$0x1] %vm335_vm0, %v334_v59  ;;  %v565_v1 = vpop.eup %564 }
 0x125   : > { %v340_v2 = vmul.f32 %v565_v1, %v337_v0 }
 0x127   : > { %v341_v3 = vsub.f32 1.0, %v340_v2 }
 0x129   : > { %342 = vst.msk [vmem:[%s251_s11] sm:$0x1] %vm335_vm0, %v341_v3 }
 0x12a PF: > { %s20_s19 = sadd.s32 1, %s696_s19   ;;  %s951_s0 = sld [smem:[#allocation12_spill]] }
 0x12b   : > { %p17_p9 = scmp.ge.s32.totalorder %s20_s19, 10   ;;  %s952_s29 = sld [smem:[#allocation13_spill]] }
 0x12c   : > { %s953_s12 = smov %s672_s13  ;;  %s954_s13 = smov %s676_s14 }
 0x12d   : > { %s955_s14 = smov %s794_s5  ;;  %s956_s15 = smov %s688_s17 }
 0x12e   : > { %s957_s16 = smov %s692_s18  ;;  %19 = sbr.rel (!%p17_p9) target bundleno = 9 (0x9), region = 101 }
 0x130   : > { %s958_s17 = smov %s951_s0 }
 0x131   : > { %s959_s18 = smov %s952_s29 }
 0x135   :  { %372 = vsyncpa [#allocation7], 1 }
 0x136   :  { %374 = vsyncpa [#allocation7 + $0x1], 1 }
 0x137   :  { %375 = vsyncpa [#allocation9], 1 }
 0x138   :  { %377 = vsyncpa [#allocation9 + $0x1], 1 }

</bundles_post_ra>
